<compile_context>
chip_gen: v7x
topology: tpu7x:2x2x1
jax: 0.10.0
libtpu: 0.0.40
codegen_flags: <defaults>
</compile_context>

<pallas_src>
import functools

import jax
import jax.numpy as jnp
from jax.experimental import pallas as pl
from jax.experimental.pallas import tpu as pltpu

LANES = 128
SUBLANES = 8
TARGET_TILE_ROWS = 4096   # 4096 x 128 f32 = 2 MiB per input per tile


def _self_mse_kernel(x_ref, y_ref, o_ref, acc_ref, *, tile_rows, valid_rows_last):
    """Accumulate sum(((x-y)/(x+y))**2) into acc_ref; final reduce on last step."""
    i = pl.program_id(0)
    last = pl.num_programs(0) - 1

    @pl.when(i == 0)
    def _():
        acc_ref[...] = jnp.zeros_like(acc_ref)

    def tile_partial(row_limit):
        x = x_ref[...].astype(jnp.float32)
        y = y_ref[...].astype(jnp.float32)
        d = x - y
        s = x + y
        if row_limit is not None:
            # Final (partial) block: rows >= row_limit are DMA garbage; zero
            # their contribution and keep the divisor finite.
            row = jax.lax.broadcasted_iota(jnp.int32, (tile_rows, LANES), 0)
            valid = row < row_limit
            d = jnp.where(valid, d, 0.0)
            s = jnp.where(valid, s, 1.0)
        # EUP reciprocal + one Newton-Raphson step (~f32 accuracy) instead of
        # an exact divide: keeps the VALU slot free (v7x), neutral elsewhere.
        inv = pl.reciprocal(s, approx=True)
        inv = inv * (2.0 - s * inv)
        r = d * inv
        rr = r * r
        if tile_rows % SUBLANES == 0:
            # Pure VPU adds: reduce only the leading (group) axis into an
            # (8, 128) vector accumulator; no per-step cross-lane reduce.
            return jnp.sum(rr.reshape(tile_rows // SUBLANES, SUBLANES, LANES), axis=0)
        # Tiny single-block path (tile_rows == total rows, not a multiple of 8).
        return jnp.sum(rr, axis=0, keepdims=True)

    if valid_rows_last is None:
        acc_ref[...] += tile_partial(None)
    else:
        @pl.when(i != last)
        def _():
            acc_ref[...] += tile_partial(None)

        @pl.when(i == last)
        def _():
            acc_ref[...] += tile_partial(valid_rows_last)

    @pl.when(i == last)
    def _():
        # Single cross-lane reduce for the whole kernel.
        o_ref[...] = jnp.sum(acc_ref[...], keepdims=True)


def self_mse_loss(x, y, *, target_tile_rows=TARGET_TILE_ROWS):
    """Pallas equivalent of SelfMSELoss().forward(x, y). Returns a scalar f32."""
    assert x.shape == y.shape, "x and y must have the same shape"
    n = x.size

    # Flatten (layout-only reshape); keep original dtype in HBM, cast in-kernel.
    xf = jnp.ravel(x)
    yf = jnp.ravel(y)

    # Pad ONLY when the element count is not lane-aligned (fill with 1.0 so the
    # extra positions contribute ((1-1)/(1+1))**2 == 0). Lane-aligned inputs
    # (the common case) incur zero extra HBM traffic.
    rem = n % LANES
    if rem:
        pad = LANES - rem
        xf = jnp.pad(xf, (0, pad), constant_values=1)
        yf = jnp.pad(yf, (0, pad), constant_values=1)
    rows = xf.size // LANES
    x2 = xf.reshape(rows, LANES)
    y2 = yf.reshape(rows, LANES)

    # Tiling bookkeeping (Python ints only).
    if rows > target_tile_rows:
        tile_rows = max(SUBLANES, (target_tile_rows // SUBLANES) * SUBLANES)
    else:
        tile_rows = rows                     # single block equal to the full dim
    num_blocks = -(-rows // tile_rows)
    tail_rows = rows - (num_blocks - 1) * tile_rows
    valid_rows_last = None if tail_rows == tile_rows else tail_rows
    acc_rows = SUBLANES if tile_rows % SUBLANES == 0 else 1

    padded = rows * LANES
    itemsize = jnp.dtype(x2.dtype).itemsize
    cost = pl.CostEstimate(
        flops=8 * padded,
        transcendentals=padded,
        bytes_accessed=2 * padded * itemsize + 4,
    )

    partial = pl.pallas_call(
        functools.partial(
            _self_mse_kernel,
            tile_rows=tile_rows,
            valid_rows_last=valid_rows_last,
        ),
        out_shape=jax.ShapeDtypeStruct((1, 1), jnp.float32),
        grid_spec=pltpu.PrefetchScalarGridSpec(
            num_scalar_prefetch=0,
            grid=(num_blocks,),
            in_specs=[
                pl.BlockSpec((tile_rows, LANES), lambda i: (i, 0)),
                pl.BlockSpec((tile_rows, LANES), lambda i: (i, 0)),
            ],
            out_specs=pl.BlockSpec((1, 1), lambda i: (0, 0)),
            scratch_shapes=[pltpu.VMEM((acc_rows, LANES), jnp.float32)],
        ),
        compiler_params=pltpu.CompilerParams(
            dimension_semantics=("arbitrary",),
        ),
        cost_estimate=cost,
    )(x2, y2)

    # Apply the mean with the true (unpadded) element count.
    return partial[0, 0] / jnp.float32(n)


if __name__ == "__main__":
    key = jax.random.PRNGKey(0)
    kx, ky = jax.random.split(key)

    # Small shapes consistent with a generic elementwise loss module.
    shape = (2, 4, 16, 16)
    # Keep values positive so x + y never hits zero (same hazard exists in the
    # PyTorch module; we just avoid it in the test inputs).
    x = jax.random.uniform(kx, shape, jnp.float32, minval=0.5, maxval=2.0)
    y = jax.random.uniform(ky, shape, jnp.float32, minval=0.5, maxval=2.0)
    loss = self_mse_loss(x, y)
    jax.block_until_ready(loss)
    ref = jnp.mean(((x - y) / (x + y)) ** 2)
    assert jnp.allclose(loss, ref, rtol=1e-5, atol=1e-6), (loss, ref)

    # Non-lane-aligned shape exercises the pad-to-128 + tiny single-block path.
    shape2 = (3, 5, 7)
    kx2, ky2 = jax.random.split(ky)
    x2 = jax.random.uniform(kx2, shape2, jnp.float32, minval=0.5, maxval=2.0)
    y2 = jax.random.uniform(ky2, shape2, jnp.float32, minval=0.5, maxval=2.0)
    loss2 = self_mse_loss(x2, y2)
    jax.block_until_ready(loss2)
    ref2 = jnp.mean(((x2 - y2) / (x2 + y2)) ** 2)
    assert jnp.allclose(loss2, ref2, rtol=1e-5, atol=1e-6), (loss2, ref2)

    # Small tile override exercises the multi-block path with a masked partial
    # final block (20 rows, tile of 8 -> 3 blocks, last block 4 valid rows).
    shape3 = (20, 128)
    kx3, ky3 = jax.random.split(ky2)
    x3 = jax.random.uniform(kx3, shape3, jnp.float32, minval=0.5, maxval=2.0)
    y3 = jax.random.uniform(ky3, shape3, jnp.float32, minval=0.5, maxval=2.0)
    loss3 = self_mse_loss(x3, y3, target_tile_rows=8)
    jax.block_until_ready(loss3)
    ref3 = jnp.mean(((x3 - y3) / (x3 + y3)) ** 2)
    assert jnp.allclose(loss3, ref3, rtol=1e-5, atol=1e-6), (loss3, ref3)

    print("KERNEL_OK")
</pallas_src>

<mosaic_0001>
module attributes {stable_mosaic.version = 11 : i64} {
  func.func @_self_mse_kernel(%arg0: i32, %arg1: memref<16x128xf32, #tpu.memory_space<vmem>>, %arg2: memref<16x128xf32, #tpu.memory_space<vmem>>, %arg3: memref<1x1xf32, #tpu.memory_space<vmem>>, %arg4: memref<8x128xf32, #tpu.memory_space<vmem>>) attributes {dimension_semantics = [#tpu.dimension_semantics<arbitrary>], iteration_bounds = array<i64: 1>, scalar_prefetch = 0 : i64, scratch_operands = 1 : i64, tpu.core_type = #tpu.core_type<tc>, window_params = [{transform_indices = @transform_0, window_bounds = array<i64: 16, 128>}, {transform_indices = @transform_1, window_bounds = array<i64: 16, 128>}, {pipeline_mode = #tpu.pipeline_mode<synchronous>, transform_indices = @transform_2, window_bounds = array<i64: 1, 1>}]} {
    %c0_i32 = arith.constant 0 : i32
    %0 = arith.cmpi eq, %arg0, %c0_i32 : i32
    %1 = arith.extui %0 : i1 to i32
    %c0_i32_0 = arith.constant 0 : i32
    %2 = arith.cmpi ne, %1, %c0_i32_0 : i32
    scf.if %2 {
      %cst_11 = arith.constant 0.000000e+00 : f32
      %22 = vector.broadcast %cst_11 : f32 to vector<8x128xf32>
      %c0_12 = arith.constant 0 : index
      %c0_13 = arith.constant 0 : index
      %23 = vector.load %arg4[%c0_12, %c0_13] : memref<8x128xf32, #tpu.memory_space<vmem>>, vector<8x128xf32>
      tpu.vector_store %arg4[%c0_12, %c0_13], %22 {strides = array<i32>} : memref<8x128xf32, #tpu.memory_space<vmem>>, vector<8x128xf32>,
    } else {
    }
    %c0 = arith.constant 0 : index
    %c0_1 = arith.constant 0 : index
    %3 = vector.load %arg4[%c0, %c0_1] : memref<8x128xf32, #tpu.memory_space<vmem>>, vector<8x128xf32>
    %c0_2 = arith.constant 0 : index
    %c0_3 = arith.constant 0 : index
    %4 = vector.load %arg1[%c0_2, %c0_3] : memref<16x128xf32, #tpu.memory_space<vmem>>, vector<16x128xf32>
    %c0_4 = arith.constant 0 : index
    %c0_5 = arith.constant 0 : index
    %5 = vector.load %arg2[%c0_4, %c0_5] : memref<16x128xf32, #tpu.memory_space<vmem>>, vector<16x128xf32>
    %6 = arith.subf %4, %5 : vector<16x128xf32>
    %7 = arith.addf %4, %5 : vector<16x128xf32>
    %8 = tpu.reciprocal %7 {approx = true} : vector<16x128xf32> -> vector<16x128xf32>
    %9 = arith.mulf %7, %8 : vector<16x128xf32>
    %cst = arith.constant 2.000000e+00 : f32
    %10 = vector.broadcast %cst : f32 to vector<16x128xf32>
    %11 = arith.subf %10, %9 : vector<16x128xf32>
    %12 = arith.mulf %8, %11 : vector<16x128xf32>
    %13 = arith.mulf %6, %12 : vector<16x128xf32>
    %14 = arith.mulf %13, %13 : vector<16x128xf32>
    %15 = vector.shape_cast %14 : vector<16x128xf32> to vector<2x8x128xf32>
    %cst_6 = arith.constant dense<0.000000e+00> : vector<8x128xf32>
    %16 = vector.multi_reduction <add>, %15, %cst_6 [0] : vector<2x8x128xf32> to vector<8x128xf32>
    %17 = arith.addf %3, %16 : vector<8x128xf32>
    %c0_7 = arith.constant 0 : index
    %c0_8 = arith.constant 0 : index
    %18 = vector.load %arg4[%c0_7, %c0_8] : memref<8x128xf32, #tpu.memory_space<vmem>>, vector<8x128xf32>
    tpu.vector_store %arg4[%c0_7, %c0_8], %17 {strides = array<i32>} : memref<8x128xf32, #tpu.memory_space<vmem>>, vector<8x128xf32>,
    %c0_i32_9 = arith.constant 0 : i32
    %19 = arith.cmpi eq, %arg0, %c0_i32_9 : i32
    %20 = arith.extui %19 : i1 to i32
    %c0_i32_10 = arith.constant 0 : i32
    %21 = arith.cmpi ne, %20, %c0_i32_10 : i32
    scf.if %21 {
      %c0_11 = arith.constant 0 : index
      %c0_12 = arith.constant 0 : index
      %22 = vector.load %arg4[%c0_11, %c0_12] : memref<8x128xf32, #tpu.memory_space<vmem>>, vector<8x128xf32>
      %23 = vector.shape_cast %22 : vector<8x128xf32> to vector<1x8x128xf32>
      %cst_13 = arith.constant dense<0.000000e+00> : vector<1xf32>
      %24 = vector.multi_reduction <add>, %23, %cst_13 [1, 2] : vector<1x8x128xf32> to vector<1xf32>
      %25 = vector.shape_cast %24 : vector<1xf32> to vector<1x1x1xf32>
      %26 = vector.extract %25[0, 0, 0] : f32 from vector<1x1x1xf32>
      %27 = vector.broadcast %26 : f32 to vector<1x1xf32>
      %c0_14 = arith.constant 0 : index
      %c0_15 = arith.constant 0 : index
      %28 = vector.load %arg3[%c0_14, %c0_15] : memref<1x1xf32, #tpu.memory_space<vmem>>, vector<1x1xf32>
      tpu.vector_store %arg3[%c0_14, %c0_15], %27 {strides = array<i32>} : memref<1x1xf32, #tpu.memory_space<vmem>>, vector<1x1xf32>,
    } else {
    }
    return
  }
  func.func @transform_0(%arg0: i32) -> (i32, i32) {
    %c0_i32 = arith.constant 0 : i32
    %c0_i32_0 = arith.constant 0 : i32
    return %arg0, %c0_i32 : i32, i32
  }
  func.func @transform_1(%arg0: i32) -> (i32, i32) {
    %c0_i32 = arith.constant 0 : i32
    %c0_i32_0 = arith.constant 0 : i32
    return %arg0, %c0_i32 : i32, i32
  }
  func.func @transform_2(%arg0: i32) -> (i32, i32) {
    %c0_i32 = arith.constant 0 : i32
    %c0_i32_0 = arith.constant 0 : i32
    %c0_i32_1 = arith.constant 0 : i32
    return %c0_i32, %c0_i32_0 : i32, i32
  }
}

</mosaic_0001>

<bundles_post_ra>
// kernel: tpu_custom_call.1
= control target key start
LH: loop header
LB: loop body
LE: loop exit
PB: predicated region body
PF: predicated region fallthrough
CT: control target
= control target key end

     0   :  { %7 = vsyncpa [#allocation4], 0  ;;  %s240_s0 = inlined_call_operand.hbm [shape: f32[16,128], index: 0, kind: input, shape index: {}]   ;;  %s241_s1 = inlined_call_operand.hbm [shape: f32[16,128], index: 1, kind: input, shape index: {}]   ;;  %s242_s2 = inlined_call_operand.hbm [shape: f32[1,1], index: 2, kind: output, shape index: {}]  }
   0x1   :  { %8 = vsyncpa [#allocation7], 0 }
   0x2   :  { %9 = vsyncpa [#allocation5], 0  ;;  %s184_s9 = smov [#allocation3]   ;;  %s112_s13 = scalar_lea.hbm %s240_s0, 256 }
   0x3   :  { %s15_s10 = sshll.u32 %s184_s9, 4  ;;  %p113_p0 = scmp.ne.s32.totalorder %s240_s0, %s112_s13  ;;  %s16_s10 = int_to_ptr.vmem [resolvable:$true] %s15_s10 }
   0x4   :  { %p116_p1 = scmp.lt.u32.totalorder %s112_s13, %s240_s0 }
   0x6   :  { %p118_p2 = pnand %p116_p1, %p113_p0 }
   0x8   :  { %121 = shalt.err (!%p118_p2)
}
   0x9   :  { %s122_s18 = scalar_lea.vmem %s16_s10, 256  ;;  %p127_p4 = scmp.lt.s32.totalorder %s16_s10, %s16_s10 }
   0xa   :  { %p123_p3 = scmp.ne.s32.totalorder %s16_s10, %s122_s18  ;;  %p128_p5 = scmp.lt.s32.totalorder %s122_s18, %s122_s18 }
   0xc   :  { %p129_p6 = por %p128_p5, %p127_p4 }
   0xe   :  { %p130_p7 = pnand %p129_p6, %p123_p3 }
  0x10   :  { %133 = shalt.err (!%p130_p7)
}
  0x11   :  { %s185_s19 = smov 128   ;;  %s186_s20 = smov 8  }
  0x12   :  { %21 = dma.hbm_to_vmem [thread:$0]  %s240_s0, 256, %s16_s10, [#allocation4], %s185_s19, %s185_s19, %s186_s20  }
  0x13   :  { %s187_s23 = smov [#allocation6]   ;;  %s134_s27 = scalar_lea.hbm %s241_s1, 256 }
  0x14   :  { %s27_s24 = sshll.u32 %s187_s23, 4  ;;  %p135_p8 = scmp.ne.s32.totalorder %s241_s1, %s134_s27  ;;  %s28_s24 = int_to_ptr.vmem [resolvable:$true] %s27_s24 }
  0x15   :  { %p138_p9 = scmp.lt.u32.totalorder %s134_s27, %s241_s1 }
  0x17   :  { %p140_p10 = pnand %p138_p9, %p135_p8 }
  0x19   :  { %143 = shalt.err (!%p140_p10)
}
  0x1a   :  { %s144_s4 = scalar_lea.vmem %s28_s24, 256  ;;  %p149_p12 = scmp.lt.s32.totalorder %s28_s24, %s28_s24 }
  0x1b   :  { %p145_p11 = scmp.ne.s32.totalorder %s28_s24, %s144_s4  ;;  %p150_p13 = scmp.lt.s32.totalorder %s144_s4, %s144_s4 }
  0x1d   :  { %p151_p0 = por %p150_p13, %p149_p12 }
  0x1f   :  { %p152_p1 = pnand %p151_p0, %p145_p11 }
  0x21   :  { %155 = shalt.err (!%p152_p1)
}
  0x22   :  { %33 = dma.hbm_to_vmem [thread:$0]  %s241_s1, 256, %s28_s24, [#allocation7], %s185_s19, %s185_s19, %s186_s20  }
  0x23   :  { %178 = dma.done.wait [#allocation4], 256  }
  0x24   :  { %179 = vsyncadd [#allocation4], 4294967040 }
  0x25   :  { %180 = dma.done.wait [#allocation7], 256  }
  0x26   :  { %181 = vsyncadd [#allocation7], 4294967040  ;;  %v46_v0 = vld [vmem:[#allocation3] sm:$0xff]  ;;  %v47_v1 = vld [vmem:[#allocation3 + $0x8] sm:$0xff]  ;;  %s188_s1 = smov [#allocation8]   ;;  %vm83_vm0 = vcmask 0  }
  0x27   :  { %v48_v2 = vld [vmem:[#allocation6] sm:$0xff]  ;;  %v49_v3 = vld [vmem:[#allocation6 + $0x8] sm:$0xff]  ;;  %s91_s6 = sshll.u32 %s188_s1, 4  ;;  %s92_s6 = int_to_ptr.vmem [resolvable:$true] %s91_s6 }
  0x28   :  { %v52_v4 = vadd.f32 %v48_v2, %v46_v0  ;;  %v53_v5 = vadd.f32 %v49_v3, %v47_v1  ;;  %v50_v10 = vsub.f32 %v46_v0, %v48_v2  ;;  %v51_v12 = vsub.f32 %v47_v1, %v49_v3  ;;  %s156_s8 = scalar_lea.vmem %s92_s6, 16  ;;  %s160_s9 = scalar_lea.vmem %s92_s6, 32 }
  0x29   :  { %p157_p2 = scmp.ne.s32.totalorder %s92_s6, %s156_s8  ;;  %p161_p3 = scmp.lt.s32.totalorder %s92_s6, %s92_s6 }
  0x2a   :  { %108 = vrcp.f32 %v52_v4  ;;  %p162_p4 = scmp.lt.s32.totalorder %s160_s9, %s156_s8 }
  0x2b   :  { %110 = vrcp.f32 %v53_v5 }
  0x2c   :  { %p163_p5 = por %p162_p4, %p161_p3 }
  0x2e   :  { %p164_p6 = pnand %p163_p5, %p157_p2 }
  0x34   :  { %v109_v6 = vpop.eup %108 }
  0x35   :  { %v111_v7 = vpop.eup %110  ;;  %v56_v8 = vmul.f32 %v109_v6, %v52_v4 }
  0x36   :  { %v57_v9 = vmul.f32 %v111_v7, %v53_v5 }
  0x37   :  { %v58_v11 = vsub.f32 2.0, %v56_v8 }
  0x38   :  { %v59_v13 = vsub.f32 2.0, %v57_v9 }
  0x39   :  { %v60_v14 = vmul.f32 %v109_v6, %v58_v11 }
  0x3a   :  { %v61_v15 = vmul.f32 %v111_v7, %v59_v13 }
  0x3b   :  { %v62_v16 = vmul.f32 %v60_v14, %v50_v10 }
  0x3c   :  { %v63_v17 = vmul.f32 %v61_v15, %v51_v12 }
  0x3d   :  { %v64_v18 = vmul.f32 %v62_v16, %v62_v16 }
  0x3e   :  { %v65_v19 = vmul.f32 %v63_v17, %v63_v17 }
  0x40   :  { %v66_v20 = vadd.f32 %v65_v19, %v64_v18 }
  0x42   :  { %73 = vadd.xlane.f32.xlu0 %v66_v20 }
  0xcf   :  { %v74_v21 = vpop.xlane.xlu0 %73 }
  0xd0   :  { %v75_v22 = vrot.slane %v74_v21, 4 }
  0xd2   :  { %v76_v23 = vadd.f32 %v75_v22, %v74_v21 }
  0xd4   :  { %v77_v24 = vrot.slane %v76_v23, 2 }
  0xd6   :  { %v78_v25 = vadd.f32 %v77_v24, %v76_v23 }
  0xd8   :  { %v79_v26 = vrot.slane %v78_v25, 1 }
  0xda   :  { %v80_v27 = vadd.f32 %v79_v26, %v78_v25 }
  0xdc   :  { %101 = vpush %v80_v27 }
 0x10d   :  { %s102_s7 = spop %101 }
 0x10e   :  { %v82_v28 = vstv %s102_s7 }
 0x10f   :  { %84 = vst.msk [vmem:[#allocation8] sm:$0x1] %vm83_vm0, %v82_v28 }
 0x110   :  { %167 = shalt.err (!%p164_p6)
}
 0x111   :  { %s168_s12 = scalar_lea.hbm %s242_s2, 16 }
 0x112   :  { %p169_p7 = scmp.ne.s32.totalorder %s242_s2, %s168_s12  ;;  %p172_p8 = scmp.lt.u32.totalorder %s168_s12, %s242_s2 }
 0x114   :  { %p174_p9 = pnand %p172_p8, %p169_p7 }
 0x116   :  { %177 = shalt.err (!%p174_p9)
}
 0x117   :  { %94 = dma.vmem_to_hbm [thread:$0]  %s92_s6, 16, %s242_s2, [#allocation5]  }
 0x118   :  { %182 = dma.done.wait [#allocation5], 16  }
 0x119   :  { %183 = vsyncadd [#allocation5], 4294967280 }
 0x11a   :  { %98 = vsyncpa [#allocation4], 1 }
 0x11b   :  { %99 = vsyncpa [#allocation7], 1 }
 0x11c   :  { %100 = vsyncpa [#allocation5], 1 }

</bundles_post_ra>
